<compile_context>
chip_gen: v6e
topology: v6e:2x2x1
jax: 0.10.0
libtpu: 0.0.40
codegen_flags: <defaults>
</compile_context>

<pallas_src>
import jax
import jax.numpy as jnp
from jax.experimental import pallas as pl
from jax.experimental.pallas import tpu as pltpu


def _relu_grad_kernel(x_ref, g_ref, o_ref):
    # Elementwise hot path: zero x where the gate tensor is negative.
    x = x_ref[...]
    g = g_ref[...]
    o_ref[...] = jnp.where(g < 0, jnp.zeros_like(x), x)


# Per-block byte budget: 3 arrays (x, gate, out) x 2 pipeline buffers x 2 MiB
# = 12 MiB peak VMEM -> fits the v5e 16 MiB scoped default with headroom, and
# is comfortably inside v6e (32 MiB scoped) and v7x (64 MiB physical) budgets.
_TARGET_BLOCK_BYTES = 2 * 1024 * 1024
_LANE = 128  # lane-dense last dim; multiple of 128 -> unmasked vector stores


def relu_grad(x: jax.Array, x2: jax.Array, *, donate_x: bool = False) -> jax.Array:
    """out = where(x2 < 0, 0, x); shape/dtype of x preserved.

    Set donate_x=True when the caller donates x to let XLA reuse its HBM
    buffer for the output (mirrors the in-place PyTorch semantics).
    """
    assert x.shape == x2.shape, "input and input2 must have the same shape"
    orig_shape = x.shape
    total = x.size
    dtype = x.dtype
    itemsize = jnp.dtype(dtype).itemsize

    # dtype-aware sublane packing: 8 rows for 32-bit, 16 for bf16, 32 for int8.
    sublane = max(8, 32 // itemsize)

    rows = pl.cdiv(total, _LANE)
    pad_elems = rows * _LANE - total

    xf = x.reshape(-1)
    gf = x2.reshape(-1)
    if pad_elems:
        # Rare ragged-tail fallback (total not a multiple of 128). Costs an
        # extra HBM pass; typical NCHW activations never hit this branch.
        xf = jnp.pad(xf, (0, pad_elems))
        gf = jnp.pad(gf, (0, pad_elems))
    xf = xf.reshape(rows, _LANE)
    gf = gf.reshape(rows, _LANE)

    # Row tile: as many rows as fit the per-block budget, rounded down to a
    # sublane multiple (f32 -> 4096 rows = 2 MiB). Small inputs use a single
    # full-extent block, which is VMEM-safe by construction of the budget.
    budget_rows = max(
        sublane, (_TARGET_BLOCK_BYTES // (_LANE * itemsize)) // sublane * sublane
    )
    tile_rows = rows if rows <= budget_rows else budget_rows

    grid = (pl.cdiv(rows, tile_rows),)

    out = pl.pallas_call(
        _relu_grad_kernel,
        out_shape=jax.ShapeDtypeStruct((rows, _LANE), dtype),
        grid_spec=pltpu.PrefetchScalarGridSpec(
            num_scalar_prefetch=0,
            grid=grid,
            in_specs=[
                pl.BlockSpec((tile_rows, _LANE), lambda i: (i, 0)),
                pl.BlockSpec((tile_rows, _LANE), lambda i: (i, 0)),
            ],
            out_specs=pl.BlockSpec((tile_rows, _LANE), lambda i: (i, 0)),
        ),
        compiler_params=pltpu.CompilerParams(
            dimension_semantics=("parallel",),
        ),
        input_output_aliases=({0: 0} if donate_x else {}),
    )(xf, gf)

    out = out.reshape(-1)
    if pad_elems:
        out = out[:total]
    return out.reshape(orig_shape)


if __name__ == "__main__":
    key = jax.random.PRNGKey(0)
    k1, k2 = jax.random.split(key)
    # Small NCHW-shaped activation tensors (module has no parameters).
    x = jax.random.normal(k1, (2, 4, 16, 16), dtype=jnp.float32)
    x2 = jax.random.normal(k2, (2, 4, 16, 16), dtype=jnp.float32)

    out = relu_grad(x, x2)
    out = jax.block_until_ready(out)

    # Reference check (plain JAX) of the PyTorch forward semantics.
    ref = jnp.where(x2 < 0, jnp.zeros_like(x), x)
    assert out.shape == x.shape and out.dtype == x.dtype
    assert jnp.allclose(out, ref), "mismatch vs reference"

    print("KERNEL_OK")
</pallas_src>

<mosaic_0001>
module attributes {stable_mosaic.version = 11 : i64} {
  func.func @_relu_grad_kernel(%arg0: i32, %arg1: memref<16x128xf32, #tpu.memory_space<vmem>>, %arg2: memref<16x128xf32, #tpu.memory_space<vmem>>, %arg3: memref<16x128xf32, #tpu.memory_space<vmem>>) attributes {dimension_semantics = [#tpu.dimension_semantics<parallel>], iteration_bounds = array<i64: 1>, scalar_prefetch = 0 : i64, scratch_operands = 0 : i64, tpu.core_type = #tpu.core_type<tc>, window_params = [{transform_indices = @transform_0, window_bounds = array<i64: 16, 128>}, {transform_indices = @transform_1, window_bounds = array<i64: 16, 128>}, {transform_indices = @transform_2, window_bounds = array<i64: 16, 128>}]} {
    %c0 = arith.constant 0 : index
    %c0_0 = arith.constant 0 : index
    %0 = vector.load %arg1[%c0, %c0_0] : memref<16x128xf32, #tpu.memory_space<vmem>>, vector<16x128xf32>
    %c0_1 = arith.constant 0 : index
    %c0_2 = arith.constant 0 : index
    %1 = vector.load %arg2[%c0_1, %c0_2] : memref<16x128xf32, #tpu.memory_space<vmem>>, vector<16x128xf32>
    %cst = arith.constant 0.000000e+00 : f32
    %2 = vector.broadcast %cst : f32 to vector<16x128xf32>
    %3 = arith.cmpf olt, %1, %2 : vector<16x128xf32>
    %cst_3 = arith.constant 0.000000e+00 : f32
    %4 = vector.broadcast %cst_3 : f32 to vector<16x128xf32>
    %5 = arith.select %3, %4, %0 : vector<16x128xi1>, vector<16x128xf32>
    %c0_4 = arith.constant 0 : index
    %c0_5 = arith.constant 0 : index
    %6 = vector.load %arg3[%c0_4, %c0_5] : memref<16x128xf32, #tpu.memory_space<vmem>>, vector<16x128xf32>
    tpu.vector_store %arg3[%c0_4, %c0_5], %5 {strides = array<i32>} : memref<16x128xf32, #tpu.memory_space<vmem>>, vector<16x128xf32>,
    return
  }
  func.func @transform_0(%arg0: i32) -> (i32, i32) {
    %c0_i32 = arith.constant 0 : i32
    %c0_i32_0 = arith.constant 0 : i32
    return %arg0, %c0_i32 : i32, i32
  }
  func.func @transform_1(%arg0: i32) -> (i32, i32) {
    %c0_i32 = arith.constant 0 : i32
    %c0_i32_0 = arith.constant 0 : i32
    return %arg0, %c0_i32 : i32, i32
  }
  func.func @transform_2(%arg0: i32) -> (i32, i32) {
    %c0_i32 = arith.constant 0 : i32
    %c0_i32_0 = arith.constant 0 : i32
    return %arg0, %c0_i32 : i32, i32
  }
}

</mosaic_0001>

<bundles_post_ra>
// kernel: tpu_custom_call.1
= control target key start
LH: loop header
LB: loop body
LE: loop exit
PB: predicated region body
PF: predicated region fallthrough
CT: control target
= control target key end

     0   :  { %7 = vsyncpa [#allocation3], 0  ;;  %s177_s0 = inlined_call_operand.hbm [shape: f32[16,128], index: 0, kind: input, shape index: {}]   ;;  %s178_s1 = inlined_call_operand.hbm [shape: f32[16,128], index: 1, kind: input, shape index: {}]   ;;  %s179_s2 = inlined_call_operand.hbm [shape: f32[16,128], index: 2, kind: output, shape index: {}]  }
   0x1   :  { %8 = vsyncpa [#allocation6], 0 }
   0x2   :  { %9 = vsyncpa [#allocation4], 0  ;;  %s139_s9 = smov [#allocation2]  }
   0x3   :  { %s15_s10 = sshll.u32 %s139_s9, 4  ;;  %s16_s10 = int_to_ptr.vmem [resolvable:$true] %s15_s10 }
   0x4   :  { %s81_s11 = scalar_lea.vmem %s16_s10, 256  ;;  %p86_p1 = scmp.lt.s32.totalorder %s16_s10, %s16_s10 }
   0x5   :  { %p82_p0 = scmp.ne.s32.totalorder %s16_s10, %s81_s11  ;;  %p87_p2 = scmp.lt.s32.totalorder %s81_s11, %s81_s11 }
   0x7   :  { %p88_p3 = por %p87_p2, %p86_p1 }
   0x9   :  { %p89_p4 = pnand %p88_p3, %p82_p0 }
   0xb   :  { %92 = shalt.err (!%p89_p4)
}
   0xc   :  { %s140_s12 = smov 128   ;;  %s141_s13 = smov 8  }
   0xd   :  { %21 = dma.hbm_to_vmem [thread:$0]  %s177_s0, 256, %s16_s10, [#allocation3], %s140_s12, %s140_s12, %s141_s13  }
   0xe   :  { %s142_s16 = smov [#allocation5]  }
   0xf   :  { %s27_s17 = sshll.u32 %s142_s16, 4  ;;  %s28_s17 = int_to_ptr.vmem [resolvable:$true] %s27_s17 }
  0x10   :  { %s101_s18 = scalar_lea.vmem %s28_s17, 256  ;;  %p106_p6 = scmp.lt.s32.totalorder %s28_s17, %s28_s17 }
  0x11   :  { %p102_p5 = scmp.ne.s32.totalorder %s28_s17, %s101_s18  ;;  %p107_p7 = scmp.lt.s32.totalorder %s101_s18, %s101_s18 }
  0x13   :  { %p108_p8 = por %p107_p7, %p106_p6 }
  0x15   :  { %p109_p9 = pnand %p108_p8, %p102_p5 }
  0x17   :  { %112 = shalt.err (!%p109_p9)
}
  0x18   :  { %33 = dma.hbm_to_vmem [thread:$0]  %s178_s1, 256, %s28_s17, [#allocation6], %s140_s12, %s140_s12, %s141_s13  }
  0x19   :  { %133 = dma.done.wait [#allocation3], 256  }
  0x1a   :  { %134 = vsyncadd [#allocation3], 4294967040 }
  0x1b   :  { %135 = dma.done.wait [#allocation6], 256  }
  0x1c   :  { %136 = vsyncadd [#allocation6], 4294967040  ;;  %s143_s0 = smov [#allocation7]   ;;  %v40_v0 = vld [vmem:[#allocation2] sm:$0xff]  ;;  %v42_v1 = vld [vmem:[#allocation5] sm:$0xff] }
  0x1d   :  { %s55_s21 = sshll.u32 %s143_s0, 4  ;;  %v41_v2 = vld [vmem:[#allocation2 + $0x8] sm:$0xff]  ;;  %vm44_vm0 = vcmp.lt.f32.partialorder %v42_v1, 0.0  ;;  %v43_v3 = vld [vmem:[#allocation5 + $0x8] sm:$0xff]  ;;  %s56_s21 = int_to_ptr.vmem [resolvable:$true] %s55_s21 }
  0x1e   :  { %v46_v4 = vsel %vm44_vm0, 0.0, %v40_v0  ;;  %vm45_vm1 = vcmp.lt.f32.partialorder %v43_v3, 0.0  ;;  %s113_s22 = scalar_lea.vmem %s56_s21, 256  ;;  %p118_p11 = scmp.lt.s32.totalorder %s56_s21, %s56_s21 }
  0x1f   :  { %48 = vst [vmem:[#allocation7] sm:$0xff] %v46_v4  ;;  %v47_v5 = vsel %vm45_vm1, 0.0, %v41_v2  ;;  %p114_p10 = scmp.ne.s32.totalorder %s56_s21, %s113_s22  ;;  %p119_p12 = scmp.lt.s32.totalorder %s113_s22, %s113_s22 }
  0x20   :  { %49 = vst [vmem:[#allocation7 + $0x8] sm:$0xff] %v47_v5 }
  0x21   :  { %p120_p13 = por %p119_p12, %p118_p11 }
  0x23   :  { %p121_p0 = pnand %p120_p13, %p114_p10 }
  0x25   :  { %124 = shalt.err (!%p121_p0)
}
  0x26   :  { %61 = dma.vmem_to_hbm [thread:$0]  %s56_s21, 256, %s179_s2, [#allocation4], %s140_s12, %s140_s12, %s141_s13  }
  0x27   :  { %137 = dma.done.wait [#allocation4], 256  }
  0x28   :  { %138 = vsyncadd [#allocation4], 4294967040 }
  0x29   :  { %65 = vsyncpa [#allocation3], 1 }
  0x2a   :  { %66 = vsyncpa [#allocation6], 1 }
  0x2b   :  { %67 = vsyncpa [#allocation4], 1 }

</bundles_post_ra>
